<compile_context>
chip_gen: v7x
topology: tpu7x:2x2x1
jax: 0.10.0
libtpu: 0.0.40
codegen_flags: <defaults>
</compile_context>

<pallas_src>
import jax
import jax.numpy as jnp
from jax.experimental import pallas as pl
from jax.experimental.pallas import tpu as pltpu

_GROUP = 8      # output rows gathered per grid step (f32 sublane tile height)
_LANE = 128     # lane width; emb_dim is padded to a multiple of this
_MIB = 2 ** 20


def _round_up(x, m):
    return (x + m - 1) // m * m


def _resident_gather_kernel(ids_ref, table_ref, out_ref):
    """Whole (padded) table VMEM-resident; gather _GROUP rows per grid step."""
    g = pl.program_id(0)
    base = g * _GROUP
    rows = [table_ref[pl.ds(ids_ref[base + r], 1), :] for r in range(_GROUP)]
    # Single sublane/lane-dense (8, emb_pad) store.
    out_ref[...] = jnp.concatenate(rows, axis=0)


def _streaming_gather_kernel(ids_ref, table_ref, out_ref, buf_ref, sem_ref):
    """Table stays in HBM; manual double-buffered row DMAs, 8 rows per step."""
    g = pl.program_id(0)
    n_groups = pl.num_programs(0)

    def issue(group, slot):
        base = group * _GROUP
        for r in range(_GROUP):
            pltpu.make_async_copy(
                table_ref.at[pl.ds(ids_ref[base + r], 1), :],
                buf_ref.at[slot, pl.ds(r, 1), :],
                sem_ref.at[slot, r],
            ).start()

    @pl.when(g == 0)
    def _prime():
        issue(0, 0)

    slot = g % 2

    # Prefetch next group's rows into the other buffer slot.
    @pl.when(g + 1 < n_groups)
    def _prefetch_next():
        issue(g + 1, 1 - slot)

    # Wait for the current group's rows.
    for r in range(_GROUP):
        pltpu.make_async_copy(
            table_ref.at[pl.ds(0, 1), :],
            buf_ref.at[slot, pl.ds(r, 1), :],
            sem_ref.at[slot, r],
        ).wait()

    out_ref[...] = buf_ref[slot]


def text_encoder_lookup(report_ids, embs_table, *, force_path=None,
                        vmem_budget_bytes=40 * _MIB):
    """Pallas equivalent of TextEncoder.forward with lookup_strings=True.

    Args:
      report_ids: int (batch,) -- index of each report string in embs_df.
      embs_table: float (num_reports, emb_dim) -- precomputed text embeddings.
      force_path: None (auto), "resident", or "stream".
      vmem_budget_bytes: table-size cutover for the VMEM-resident path
        (conservative for v7x's 64 MiB physical VMEM; v5e/v6e have 128 MiB).

    Returns:
      float32 (batch, emb_dim) gathered embeddings.
    """
    batch = report_ids.shape[0]
    num_reports, emb_dim = embs_table.shape

    # Bounds safety: clamp indices so no DMA source is out of range.
    ids = jnp.clip(report_ids.astype(jnp.int32), 0, num_reports - 1)

    batch_pad = _round_up(batch, _GROUP)
    nrep_pad = _round_up(num_reports, _GROUP)
    emb_pad = _round_up(emb_dim, _LANE)

    ids_pad = jnp.pad(ids, (0, batch_pad - batch))
    # In a real deployment the table would be padded once at load time.
    table_pad = jnp.pad(
        embs_table.astype(jnp.float32),
        ((0, nrep_pad - num_reports), (0, emb_pad - emb_dim)))

    table_bytes = nrep_pad * emb_pad * 4
    out_block_bytes = _GROUP * emb_pad * 4
    n_groups = batch_pad // _GROUP

    if force_path is None:
        resident = table_bytes <= vmem_budget_bytes
    else:
        resident = force_path == "resident"

    out_shape = jax.ShapeDtypeStruct((batch_pad, emb_pad), jnp.float32)

    if resident:
        # Table + double-buffered output blocks + slack; capped at 56 MiB so it
        # stays within v7x's 64 MiB physical VMEM (v5e/v6e: 128 MiB physical,
        # but raise above their 16/32 MiB scoped defaults explicitly).
        vmem_limit = min(
            max(table_bytes + 4 * out_block_bytes + 2 * _MIB, 16 * _MIB),
            56 * _MIB)
        grid_spec = pltpu.PrefetchScalarGridSpec(
            num_scalar_prefetch=1,
            grid=(n_groups,),
            # Constant block index -> table DMA'd once, resident across steps.
            in_specs=[pl.BlockSpec((nrep_pad, emb_pad),
                                   lambda g, ids_r: (0, 0))],
            out_specs=pl.BlockSpec((_GROUP, emb_pad),
                                   lambda g, ids_r: (g, 0)),
        )
        out = pl.pallas_call(
            _resident_gather_kernel,
            out_shape=out_shape,
            grid_spec=grid_spec,
            compiler_params=pltpu.CompilerParams(
                dimension_semantics=("parallel",),
                vmem_limit_bytes=int(vmem_limit)),
            cost_estimate=pl.CostEstimate(
                flops=0, transcendentals=0,
                bytes_accessed=int(table_bytes + 2 * batch_pad * emb_pad * 4)),
        )(ids_pad, table_pad)
    else:
        grid_spec = pltpu.PrefetchScalarGridSpec(
            num_scalar_prefetch=1,
            grid=(n_groups,),
            in_specs=[pl.BlockSpec(memory_space=pl.ANY)],
            out_specs=pl.BlockSpec((_GROUP, emb_pad),
                                   lambda g, ids_r: (g, 0)),
            scratch_shapes=[
                pltpu.VMEM((2, _GROUP, emb_pad), jnp.float32),
                pltpu.SemaphoreType.DMA((2, _GROUP)),
            ],
        )
        out = pl.pallas_call(
            _streaming_gather_kernel,
            out_shape=out_shape,
            grid_spec=grid_spec,
            # Cross-step prefetch carries scratch state between grid steps, so
            # the axis must stay "arbitrary" (per-core priming would be needed
            # to shard it across v7x's two TensorCores).
            compiler_params=pltpu.CompilerParams(
                dimension_semantics=("arbitrary",)),
            cost_estimate=pl.CostEstimate(
                flops=0, transcendentals=0,
                bytes_accessed=int(2 * batch_pad * emb_pad * 4)),
        )(ids_pad, table_pad)

    return out[:batch, :emb_dim]


if __name__ == "__main__":
    keys = jax.random.split(jax.random.PRNGKey(0), 4)

    def check(num_reports, emb_dim, batch, k_table, k_ids):
        table = jax.random.normal(
            k_table, (num_reports, emb_dim), dtype=jnp.float32)
        ids = jax.random.randint(
            k_ids, (batch,), 0, num_reports, dtype=jnp.int32)
        ref = table[ids]  # stacking per-string dataframe lookups == row gather
        for path in (None, "stream"):   # auto (VMEM-resident here) + streaming
            out = jax.block_until_ready(
                text_encoder_lookup(ids, table, force_path=path))
            assert out.shape == (batch, emb_dim), (path, out.shape)
            assert out.dtype == jnp.float32, (path, out.dtype)
            assert jnp.allclose(out, ref), f"mismatch vs reference (path={path})"

    # Small shapes consistent with the module: a batch of 2 report strings
    # resolved against a 16-row precomputed text-embedding table.
    check(num_reports=16, emb_dim=32, batch=2, k_table=keys[0], k_ids=keys[1])

    # Unaligned shapes + several 8-row groups (exercises padding and the
    # double-buffered streaming path across multiple grid steps).
    check(num_reports=50, emb_dim=200, batch=20, k_table=keys[2], k_ids=keys[3])

    print("KERNEL_OK")
</pallas_src>

<mosaic_0001>
module attributes {stable_mosaic.version = 11 : i64} {
  func.func @_resident_gather_kernel(%arg0: i32, %arg1: memref<8xi32, #tpu.memory_space<smem>>, %arg2: memref<16x128xf32, #tpu.memory_space<vmem>>, %arg3: memref<8x128xf32, #tpu.memory_space<vmem>>) attributes {dimension_semantics = [#tpu.dimension_semantics<parallel>], iteration_bounds = array<i64: 1>, scalar_prefetch = 1 : i64, scratch_operands = 0 : i64, tpu.core_type = #tpu.core_type<tc>, window_params = [{pipeline_mode = #tpu.pipeline_mode<synchronous>, transform_indices = @transform_0, window_bounds = array<i64: 16, 128>}, {transform_indices = @transform_1, window_bounds = array<i64: 8, 128>}]} {
    %c8_i32 = arith.constant 8 : i32
    %0 = arith.muli %arg0, %c8_i32 : i32
    %c0_i32 = arith.constant 0 : i32
    %1 = arith.addi %0, %c0_i32 : i32
    %2 = arith.index_cast %1 : i32 to index
    %3 = memref.load %arg1[%2] : memref<8xi32, #tpu.memory_space<smem>>
    %4 = arith.index_cast %3 : i32 to index
    %c0 = arith.constant 0 : index
    %5 = vector.load %arg2[%4, %c0] : memref<16x128xf32, #tpu.memory_space<vmem>>, vector<1x128xf32>
    %c1_i32 = arith.constant 1 : i32
    %6 = arith.addi %0, %c1_i32 : i32
    %7 = arith.index_cast %6 : i32 to index
    %8 = memref.load %arg1[%7] : memref<8xi32, #tpu.memory_space<smem>>
    %9 = arith.index_cast %8 : i32 to index
    %c0_0 = arith.constant 0 : index
    %10 = vector.load %arg2[%9, %c0_0] : memref<16x128xf32, #tpu.memory_space<vmem>>, vector<1x128xf32>
    %c2_i32 = arith.constant 2 : i32
    %11 = arith.addi %0, %c2_i32 : i32
    %12 = arith.index_cast %11 : i32 to index
    %13 = memref.load %arg1[%12] : memref<8xi32, #tpu.memory_space<smem>>
    %14 = arith.index_cast %13 : i32 to index
    %c0_1 = arith.constant 0 : index
    %15 = vector.load %arg2[%14, %c0_1] : memref<16x128xf32, #tpu.memory_space<vmem>>, vector<1x128xf32>
    %c3_i32 = arith.constant 3 : i32
    %16 = arith.addi %0, %c3_i32 : i32
    %17 = arith.index_cast %16 : i32 to index
    %18 = memref.load %arg1[%17] : memref<8xi32, #tpu.memory_space<smem>>
    %19 = arith.index_cast %18 : i32 to index
    %c0_2 = arith.constant 0 : index
    %20 = vector.load %arg2[%19, %c0_2] : memref<16x128xf32, #tpu.memory_space<vmem>>, vector<1x128xf32>
    %c4_i32 = arith.constant 4 : i32
    %21 = arith.addi %0, %c4_i32 : i32
    %22 = arith.index_cast %21 : i32 to index
    %23 = memref.load %arg1[%22] : memref<8xi32, #tpu.memory_space<smem>>
    %24 = arith.index_cast %23 : i32 to index
    %c0_3 = arith.constant 0 : index
    %25 = vector.load %arg2[%24, %c0_3] : memref<16x128xf32, #tpu.memory_space<vmem>>, vector<1x128xf32>
    %c5_i32 = arith.constant 5 : i32
    %26 = arith.addi %0, %c5_i32 : i32
    %27 = arith.index_cast %26 : i32 to index
    %28 = memref.load %arg1[%27] : memref<8xi32, #tpu.memory_space<smem>>
    %29 = arith.index_cast %28 : i32 to index
    %c0_4 = arith.constant 0 : index
    %30 = vector.load %arg2[%29, %c0_4] : memref<16x128xf32, #tpu.memory_space<vmem>>, vector<1x128xf32>
    %c6_i32 = arith.constant 6 : i32
    %31 = arith.addi %0, %c6_i32 : i32
    %32 = arith.index_cast %31 : i32 to index
    %33 = memref.load %arg1[%32] : memref<8xi32, #tpu.memory_space<smem>>
    %34 = arith.index_cast %33 : i32 to index
    %c0_5 = arith.constant 0 : index
    %35 = vector.load %arg2[%34, %c0_5] : memref<16x128xf32, #tpu.memory_space<vmem>>, vector<1x128xf32>
    %c7_i32 = arith.constant 7 : i32
    %36 = arith.addi %0, %c7_i32 : i32
    %37 = arith.index_cast %36 : i32 to index
    %38 = memref.load %arg1[%37] : memref<8xi32, #tpu.memory_space<smem>>
    %39 = arith.index_cast %38 : i32 to index
    %c0_6 = arith.constant 0 : index
    %40 = vector.load %arg2[%39, %c0_6] : memref<16x128xf32, #tpu.memory_space<vmem>>, vector<1x128xf32>
    %41 = tpu.concatenate %5, %10, %15, %20, %25, %30, %35, %40 in 0 : vector<1x128xf32>, vector<1x128xf32>, vector<1x128xf32>, vector<1x128xf32>, vector<1x128xf32>, vector<1x128xf32>, vector<1x128xf32>, vector<1x128xf32> -> vector<8x128xf32>
    %c0_7 = arith.constant 0 : index
    %c0_8 = arith.constant 0 : index
    %42 = vector.load %arg3[%c0_7, %c0_8] : memref<8x128xf32, #tpu.memory_space<vmem>>, vector<8x128xf32>
    tpu.vector_store %arg3[%c0_7, %c0_8], %41 {strides = array<i32>} : memref<8x128xf32, #tpu.memory_space<vmem>>, vector<8x128xf32>,
    return
  }
  func.func @transform_0(%arg0: i32, %arg1: memref<8xi32, #tpu.memory_space<smem>>) -> (i32, i32) {
    %c0_i32 = arith.constant 0 : i32
    %c0_i32_0 = arith.constant 0 : i32
    %c0_i32_1 = arith.constant 0 : i32
    return %c0_i32, %c0_i32_0 : i32, i32
  }
  func.func @transform_1(%arg0: i32, %arg1: memref<8xi32, #tpu.memory_space<smem>>) -> (i32, i32) {
    %c0_i32 = arith.constant 0 : i32
    %c0_i32_0 = arith.constant 0 : i32
    return %arg0, %c0_i32 : i32, i32
  }
}

</mosaic_0001>

<bundles_post_ra>
// kernel: tpu_custom_call.1
= control target key start
LH: loop header
LB: loop body
LE: loop exit
PB: predicated region body
PF: predicated region fallthrough
CT: control target
= control target key end

     0   :  { %s248_s0 = inlined_call_operand.hbm [shape: s32[8], index: 0, kind: input, shape index: {}]   ;;  %s249_s1 = inlined_call_operand.hbm [shape: f32[16,128], index: 1, kind: input, shape index: {}]   ;;  %s250_s2 = inlined_call_operand.hbm [shape: f32[8,128], index: 2, kind: output, shape index: {}]  }
   0x1   :  { %s131_s11 = scalar_lea.hbm %s248_s0, 16 }
   0x2   :  { %p132_p0 = scmp.ne.s32.totalorder %s248_s0, %s131_s11  ;;  %p135_p1 = scmp.lt.u32.totalorder %s131_s11, %s248_s0 }
   0x4   :  { %p137_p2 = pnand %p135_p1, %p132_p0 }
   0x6   :  { %140 = shalt.err (!%p137_p2)  }
   0x7   :  { %s191_s16 = smov [#allocation3]  }
   0x8   :  { %8 = dma.hbm_to_smem %s248_s0, 16, %s191_s16, [#allocation2] }
   0x9   :  { %185 = dma.done.wait [#allocation2], 16 }
   0xa   :  { %186 = vsyncadd [#allocation2], 4294967280 }
   0xb   :  { %10 = sfence }
   0xc   :  { %11 = vsyncpa [#allocation5], 0 }
   0xd   :  { %12 = vsyncpa [#allocation6], 0  ;;  %s192_s19 = smov [#allocation4]   ;;  %s141_s23 = scalar_lea.hbm %s249_s1, 256 }
   0xe   :  { %s18_s20 = sshll.u32 %s192_s19, 4  ;;  %p142_p3 = scmp.ne.s32.totalorder %s249_s1, %s141_s23  ;;  %s19_s20 = int_to_ptr.vmem [resolvable:$true] %s18_s20 }
   0xf   :  { %p145_p4 = scmp.lt.u32.totalorder %s141_s23, %s249_s1 }
  0x11   :  { %p147_p5 = pnand %p145_p4, %p142_p3 }
  0x13   :  { %150 = shalt.err (!%p147_p5)
}
  0x14   :  { %s151_s0 = scalar_lea.vmem %s19_s20, 256  ;;  %p156_p7 = scmp.lt.s32.totalorder %s19_s20, %s19_s20 }
  0x15   :  { %p152_p6 = scmp.ne.s32.totalorder %s19_s20, %s151_s0  ;;  %p157_p8 = scmp.lt.s32.totalorder %s151_s0, %s151_s0 }
  0x17   :  { %p158_p9 = por %p157_p8, %p156_p7 }
  0x19   :  { %p159_p10 = pnand %p158_p9, %p152_p6 }
  0x1b   :  { %162 = shalt.err (!%p159_p10)
}
  0x1c   :  { %s193_s28 = smov 128   ;;  %s194_s29 = smov 8  }
  0x1d   :  { %24 = dma.hbm_to_vmem [thread:$0]  %s249_s1, 256, %s19_s20, [#allocation5], %s193_s28, %s193_s28, %s194_s29  }
  0x1e   :  { %187 = dma.done.wait [#allocation5], 256  }
  0x1f   :  { %188 = vsyncadd [#allocation5], 4294967040  ;;  %s29_s4 = sld [smem:[#allocation3]]  ;;  %s119_s5 = sld [smem:[#allocation3 + $0x1]]  ;;  %vm81_vm0 = vcmask 1040384   ;;  %vm83_vm1 = vcmask 1041408  }
  0x20   :  { %s120_s6 = sld [smem:[#allocation3 + $0x2]]  ;;  %s121_s7 = sld [smem:[#allocation3 + $0x3]]  ;;  %vm85_vm2 = vcmask 1042432   ;;  %vm87_vm3 = vcmask 1043456   ;;  %vm89_vm4 = vcmask 1044480   ;;  %vm91_vm5 = vcmask 1045504  }
  0x21   :  { %s122_s8 = sld [smem:[#allocation3 + $0x4]]  ;;  %s123_s9 = sld [smem:[#allocation3 + $0x5]]  ;;  %vm93_vm6 = vcmask 1046528  }
  0x22   :  { %s124_s10 = sld [smem:[#allocation3 + $0x6]]  ;;  %s125_s11 = sld [smem:[#allocation3 + $0x7]] }
  0x23   :  { %s195_s19 = smov [#allocation7]  }
  0x24   :  { %s102_s20 = sshll.u32 %s195_s19, 4  ;;  %s103_s20 = int_to_ptr.vmem [resolvable:$true] %s102_s20 }
  0x25   :  { %s30_s12 = scalar_lea.vmem [#allocation4], %s29_s4  ;;  %s34_s13 = scalar_lea.vmem [#allocation4], %s119_s5 }
  0x26   :  { %v31_v0 = vld [vmem:[%s30_s12] sm:$0x1]  ;;  %s38_s14 = scalar_lea.vmem [#allocation4], %s120_s6  ;;  %s42_s15 = scalar_lea.vmem [#allocation4], %s121_s7 }
  0x27   :  { %v35_v1 = vld [vmem:[%s34_s13] sm:$0x1]  ;;  %s46_s1 = scalar_lea.vmem [#allocation4], %s122_s8  ;;  %s50_s16 = scalar_lea.vmem [#allocation4], %s123_s9 }
  0x28   :  { %v39_v2 = vld [vmem:[%s38_s14] sm:$0x1]  ;;  %s54_s17 = scalar_lea.vmem [#allocation4], %s124_s10  ;;  %v61_v7 = vrot.slane %v35_v1, 7  ;;  %s58_s18 = scalar_lea.vmem [#allocation4], %s125_s11 }
  0x29   :  { %v43_v3 = vld [vmem:[%s42_s15] sm:$0x1]  ;;  %v64_v8 = vrot.slane %v39_v2, 6  ;;  %s163_s21 = scalar_lea.vmem %s103_s20, 128  ;;  %p168_p12 = scmp.lt.s32.totalorder %s103_s20, %s103_s20 }
  0x2a   :  { %v47_v4 = vld [vmem:[%s46_s1] sm:$0x1]  ;;  %v67_v10 = vrot.slane %v43_v3, 5  ;;  %v82_v13 = vsel %vm81_vm0, %v31_v0, %v61_v7  ;;  %p164_p11 = scmp.ne.s32.totalorder %s103_s20, %s163_s21  ;;  %p169_p13 = scmp.lt.s32.totalorder %s163_s21, %s163_s21 }
  0x2b   :  { %v51_v5 = vld [vmem:[%s50_s16] sm:$0x1]  ;;  %v70_v11 = vrot.slane %v47_v4, 4  ;;  %v84_v15 = vsel %vm83_vm1, %v82_v13, %v64_v8 }
  0x2c   :  { %v55_v6 = vld [vmem:[%s54_s17] sm:$0x1]  ;;  %v73_v12 = vrot.slane %v51_v5, 3  ;;  %v86_v17 = vsel %vm85_vm2, %v84_v15, %v67_v10  ;;  %p170_p0 = por %p169_p13, %p168_p12 }
  0x2d   :  { %v59_v9 = vld [vmem:[%s58_s18] sm:$0x1]  ;;  %v76_v14 = vrot.slane %v55_v6, 2  ;;  %v88_v18 = vsel %vm87_vm3, %v86_v17, %v70_v11 }
  0x2e   :  { %v79_v16 = vrot.slane %v59_v9, 1  ;;  %v90_v19 = vsel %vm89_vm4, %v88_v18, %v73_v12  ;;  %p171_p1 = pnand %p170_p0, %p164_p11 }
  0x2f   :  { %v92_v20 = vsel %vm91_vm5, %v90_v19, %v76_v14 }
  0x30   :  { %v94_v21 = vsel %vm93_vm6, %v92_v20, %v79_v16 }
  0x31   :  { %95 = vst [vmem:[#allocation7] sm:$0xff] %v94_v21 }
  0x32   :  { %174 = shalt.err (!%p171_p1)
}
  0x33   :  { %s175_s24 = scalar_lea.hbm %s250_s2, 128 }
  0x34   :  { %p176_p2 = scmp.ne.s32.totalorder %s250_s2, %s175_s24  ;;  %p179_p3 = scmp.lt.u32.totalorder %s175_s24, %s250_s2 }
  0x36   :  { %p181_p4 = pnand %p179_p3, %p176_p2 }
  0x38   :  { %184 = shalt.err (!%p181_p4)
}
  0x39   :  { %105 = dma.vmem_to_hbm [thread:$0]  %s103_s20, 128, %s250_s2, [#allocation6]  }
  0x3a   :  { %189 = dma.done.wait [#allocation6], 128  }
  0x3b   :  { %190 = vsyncadd [#allocation6], 4294967168 }
  0x3c   :  { %109 = vsyncpa [#allocation5], 1 }
  0x3d   :  { %110 = vsyncpa [#allocation6], 1 }

</bundles_post_ra>
